<compile_context>
chip_gen: v6e
topology: v6e:2x2x1
jax: 0.10.0
libtpu: 0.0.40
codegen_flags: <defaults>
</compile_context>

<pallas_src>
import functools

import jax
import jax.numpy as jnp
from jax.experimental import pallas as pl
from jax.experimental.pallas import tpu as pltpu


def _round_up(x, m):
    return -(-x // m) * m


def _pad_flat_kernel(top, left, h, w, out_w, x_ref, o_ref):
    """Lane-dense path for narrow images (out_w < 128).

    x_ref: VMEM (bp, h*w), o_ref: VMEM (bp, out_h*out_w).  The flat layout
    keeps the zero fill and the output writeback on dense 128-lane rows.
    The per-row interior copies use static (compile-time) offsets; `left`
    is generally not 128-aligned, so they still lane-rotate, but they touch
    only the h*w interior elements.
    """
    o_ref[...] = jnp.zeros(o_ref.shape, o_ref.dtype)
    for r in range(h):  # static unroll: every offset is a Python int
        dst = (r + top) * out_w + left
        o_ref[:, pl.ds(dst, w)] = x_ref[:, pl.ds(r * w, w)]


def _pad_rows_kernel(top, left, h, w, out_h, out_w, x_ref, o_ref):
    """3-D path for wide / tall images.

    x_ref: VMEM (bp, h, w), o_ref: VMEM (bp, out_h, out_w).  Zero only the
    border (top/bottom row bands and left/right strips), then store the
    input once into the interior at a static offset -- no redundant
    zero-then-overwrite of the interior.
    """
    bp = o_ref.shape[0]
    bottom = out_h - top - h
    right = out_w - left - w
    if top:
        o_ref[:, pl.ds(0, top), :] = jnp.zeros((bp, top, out_w), o_ref.dtype)
    if bottom:
        o_ref[:, pl.ds(top + h, bottom), :] = jnp.zeros(
            (bp, bottom, out_w), o_ref.dtype)
    if left:
        o_ref[:, pl.ds(top, h), pl.ds(0, left)] = jnp.zeros(
            (bp, h, left), o_ref.dtype)
    if right:
        o_ref[:, pl.ds(top, h), pl.ds(left + w, right)] = jnp.zeros(
            (bp, h, right), o_ref.dtype)
    o_ref[:, pl.ds(top, h), pl.ds(left, w)] = x_ref[...]


def img_pad(img, img_size):
    """Center zero-pad `img` (..., H, W) up to at least (img_size, img_size)."""
    shape = img.shape
    h, w = shape[-2], shape[-1]

    # Same (static) offset math as the torch reference forward().
    left = (img_size - w) // 2
    right = img_size - w - left
    top = (img_size - h) // 2
    bottom = img_size - h - top
    left, top = max(left, 0), max(top, 0)
    right, bottom = max(right, 0), max(bottom, 0)
    out_h = h + top + bottom
    out_w = w + left + right
    if (top, bottom, left, right) == (0, 0, 0, 0):
        return img  # already at least img_size in both dims

    lead = shape[:-2]
    planes = 1
    for d in lead:
        planes *= d

    itemsize = jnp.dtype(img.dtype).itemsize
    sub = max(1, 32 // itemsize)     # min sublane tile: f32 8, bf16 16, int8 32
    lane = 128

    # Lane-dense flat path for narrow images (bounded static row unroll).
    flat = (out_w < lane) and (h <= 256)

    # Padded (VMEM-layout) bytes per plane, per buffer.
    if flat:
        in_plane = _round_up(h * w, lane) * itemsize
        out_plane = _round_up(out_h * out_w, lane) * itemsize
    else:
        in_plane = _round_up(h, sub) * _round_up(w, lane) * itemsize
        out_plane = _round_up(out_h, sub) * _round_up(out_w, lane) * itemsize
    per_plane = in_plane + out_plane

    # ~2 MiB of padded in+out bytes per grid step; double-buffered that is
    # ~4 MiB of VMEM, comfortably inside v5e/v6e/v7x scoped limits.
    target = 2 * 1024 * 1024
    bp_budget = max(1, target // per_plane)

    if flat:
        # Flat blocks put the plane axis on sublanes: the block's second-minor
        # dim must be a multiple of the sublane tile or equal the full array
        # dim.  Split into >=2 steps when that is legal; otherwise (tiny
        # workloads, planes < 2*sub) a single block is both legal and optimal.
        if planes >= 2 * sub:
            bp = min(bp_budget, pl.cdiv(planes, 2))
            bp = max(sub, bp - (bp % sub))
        else:
            bp = planes
    else:
        # 3-D blocks: the last two dims are the full plane, the leading plane
        # axis is unconstrained, so any bp (and a ragged last block) is legal.
        bp = max(1, min(bp_budget, planes))
        if planes >= 2:
            bp = min(bp, pl.cdiv(planes, 2))

    grid = (pl.cdiv(planes, bp),)    # ragged last block handled by Pallas

    # Double-buffered VMEM footprint of the chosen blocks.
    bp_padded = _round_up(bp, sub) if flat else bp
    vmem_need = 2 * bp_padded * per_plane
    vmem_limit = int(min(max(2 * vmem_need, 8 * 1024 * 1024), 64 * 1024 * 1024))

    cparams = pltpu.CompilerParams(
        dimension_semantics=("parallel",),
        vmem_limit_bytes=vmem_limit,
    )
    cost = pl.CostEstimate(
        flops=0,
        transcendentals=0,
        bytes_accessed=planes * (h * w + out_h * out_w) * itemsize,
    )

    if flat:
        x = img.reshape(planes, h * w)
        kernel = functools.partial(_pad_flat_kernel, top, left, h, w, out_w)
        out = pl.pallas_call(
            kernel,
            out_shape=jax.ShapeDtypeStruct((planes, out_h * out_w), img.dtype),
            grid=grid,
            in_specs=[pl.BlockSpec((bp, h * w), lambda i: (i, 0))],
            out_specs=pl.BlockSpec((bp, out_h * out_w), lambda i: (i, 0)),
            compiler_params=cparams,
            cost_estimate=cost,
        )(x)
    else:
        x = img.reshape(planes, h, w)
        kernel = functools.partial(
            _pad_rows_kernel, top, left, h, w, out_h, out_w)
        out = pl.pallas_call(
            kernel,
            out_shape=jax.ShapeDtypeStruct((planes, out_h, out_w), img.dtype),
            grid=grid,
            in_specs=[pl.BlockSpec((bp, h, w), lambda i: (i, 0, 0))],
            out_specs=pl.BlockSpec((bp, out_h, out_w), lambda i: (i, 0, 0)),
            compiler_params=cparams,
            cost_estimate=cost,
        )(x)

    return out.reshape(*lead, out_h, out_w)


class ImgPad:
    """JAX/Pallas port of the torch `ImgPad` nn.Module."""

    def __init__(self, img_size):
        self.img_size = img_size

    def __call__(self, img):
        return img_pad(img, self.img_size)


if __name__ == "__main__":
    key = jax.random.PRNGKey(0)
    k0, k1, k2, k3 = jax.random.split(key, 4)

    # 4-D NCHW input, symmetric pad: 16x16 -> 24x24 (lane-dense flat path).
    x = jax.random.uniform(k0, (2, 4, 16, 16), dtype=jnp.float32)
    out = jax.block_until_ready(ImgPad(img_size=24)(x))
    ref = jnp.pad(x, ((0, 0), (0, 0), (4, 4), (4, 4)))
    assert out.shape == (2, 4, 24, 24), out.shape
    assert jnp.array_equal(out, ref)

    # 3-D CHW input, asymmetric pad: (10, 7) -> (16, 16), top/bottom=3/3,
    # left/right=4/5 (flat path, single block).
    y = jax.random.uniform(k1, (3, 10, 7), dtype=jnp.float32)
    out2 = jax.block_until_ready(ImgPad(img_size=16)(y))
    ref2 = jnp.pad(y, ((0, 0), (3, 3), (4, 5)))
    assert out2.shape == (3, 16, 16), out2.shape
    assert jnp.array_equal(out2, ref2)

    # Wide input (out_w >= 128): 3-D border-only path, ragged last grid block.
    z = jax.random.uniform(k2, (5, 8, 130), dtype=jnp.float32)
    out3 = jax.block_until_ready(ImgPad(img_size=136)(z))
    ref3 = jnp.pad(z, ((0, 0), (64, 64), (3, 3)))
    assert out3.shape == (5, 136, 136), out3.shape
    assert jnp.array_equal(out3, ref3)

    # Flat path with multiple grid steps + ragged last block (21 planes).
    u = jax.random.uniform(k3, (3, 7, 16, 16), dtype=jnp.float32)
    out4 = jax.block_until_ready(ImgPad(img_size=24)(u))
    ref4 = jnp.pad(u, ((0, 0), (0, 0), (4, 4), (4, 4)))
    assert out4.shape == (3, 7, 24, 24), out4.shape
    assert jnp.array_equal(out4, ref4)

    print("KERNEL_OK")
</pallas_src>

<mosaic_0001>
module attributes {stable_mosaic.version = 11 : i64} {
  func.func @_pad_flat_kernel(%arg0: i32, %arg1: memref<8x256xf32, #tpu.memory_space<vmem>>, %arg2: memref<8x576xf32, #tpu.memory_space<vmem>>) attributes {dimension_semantics = [#tpu.dimension_semantics<parallel>], iteration_bounds = array<i64: 1>, scalar_prefetch = 0 : i64, scratch_operands = 0 : i64, tpu.core_type = #tpu.core_type<tc>, window_params = [{transform_indices = @transform_0, window_bounds = array<i64: 8, 256>}, {transform_indices = @transform_1, window_bounds = array<i64: 8, 576>}]} {
    %cst = arith.constant 0.000000e+00 : f32
    %0 = vector.broadcast %cst : f32 to vector<8x576xf32>
    %c0 = arith.constant 0 : index
    %c0_0 = arith.constant 0 : index
    %1 = vector.load %arg2[%c0, %c0_0] : memref<8x576xf32, #tpu.memory_space<vmem>>, vector<8x576xf32>
    tpu.vector_store %arg2[%c0, %c0_0], %0 {strides = array<i32>} : memref<8x576xf32, #tpu.memory_space<vmem>>, vector<8x576xf32>,
    %c0_1 = arith.constant 0 : index
    %c0_2 = arith.constant 0 : index
    %2 = vector.load %arg1[%c0_1, %c0_2] : memref<8x256xf32, #tpu.memory_space<vmem>>, vector<8x16xf32>
    %c0_3 = arith.constant 0 : index
    %c100 = arith.constant 100 : index
    %3 = vector.load %arg2[%c0_3, %c100] : memref<8x576xf32, #tpu.memory_space<vmem>>, vector<8x16xf32>
    tpu.vector_store %arg2[%c0_3, %c100], %2 {strides = array<i32>} : memref<8x576xf32, #tpu.memory_space<vmem>>, vector<8x16xf32>,
    %c0_4 = arith.constant 0 : index
    %c16 = arith.constant 16 : index
    %4 = vector.load %arg1[%c0_4, %c16] : memref<8x256xf32, #tpu.memory_space<vmem>>, vector<8x16xf32>
    %c0_5 = arith.constant 0 : index
    %c124 = arith.constant 124 : index
    %5 = vector.load %arg2[%c0_5, %c124] : memref<8x576xf32, #tpu.memory_space<vmem>>, vector<8x16xf32>
    tpu.vector_store %arg2[%c0_5, %c124], %4 {strides = array<i32>} : memref<8x576xf32, #tpu.memory_space<vmem>>, vector<8x16xf32>,
    %c0_6 = arith.constant 0 : index
    %c32 = arith.constant 32 : index
    %6 = vector.load %arg1[%c0_6, %c32] : memref<8x256xf32, #tpu.memory_space<vmem>>, vector<8x16xf32>
    %c0_7 = arith.constant 0 : index
    %c148 = arith.constant 148 : index
    %7 = vector.load %arg2[%c0_7, %c148] : memref<8x576xf32, #tpu.memory_space<vmem>>, vector<8x16xf32>
    tpu.vector_store %arg2[%c0_7, %c148], %6 {strides = array<i32>} : memref<8x576xf32, #tpu.memory_space<vmem>>, vector<8x16xf32>,
    %c0_8 = arith.constant 0 : index
    %c48 = arith.constant 48 : index
    %8 = vector.load %arg1[%c0_8, %c48] : memref<8x256xf32, #tpu.memory_space<vmem>>, vector<8x16xf32>
    %c0_9 = arith.constant 0 : index
    %c172 = arith.constant 172 : index
    %9 = vector.load %arg2[%c0_9, %c172] : memref<8x576xf32, #tpu.memory_space<vmem>>, vector<8x16xf32>
    tpu.vector_store %arg2[%c0_9, %c172], %8 {strides = array<i32>} : memref<8x576xf32, #tpu.memory_space<vmem>>, vector<8x16xf32>,
    %c0_10 = arith.constant 0 : index
    %c64 = arith.constant 64 : index
    %10 = vector.load %arg1[%c0_10, %c64] : memref<8x256xf32, #tpu.memory_space<vmem>>, vector<8x16xf32>
    %c0_11 = arith.constant 0 : index
    %c196 = arith.constant 196 : index
    %11 = vector.load %arg2[%c0_11, %c196] : memref<8x576xf32, #tpu.memory_space<vmem>>, vector<8x16xf32>
    tpu.vector_store %arg2[%c0_11, %c196], %10 {strides = array<i32>} : memref<8x576xf32, #tpu.memory_space<vmem>>, vector<8x16xf32>,
    %c0_12 = arith.constant 0 : index
    %c80 = arith.constant 80 : index
    %12 = vector.load %arg1[%c0_12, %c80] : memref<8x256xf32, #tpu.memory_space<vmem>>, vector<8x16xf32>
    %c0_13 = arith.constant 0 : index
    %c220 = arith.constant 220 : index
    %13 = vector.load %arg2[%c0_13, %c220] : memref<8x576xf32, #tpu.memory_space<vmem>>, vector<8x16xf32>
    tpu.vector_store %arg2[%c0_13, %c220], %12 {strides = array<i32>} : memref<8x576xf32, #tpu.memory_space<vmem>>, vector<8x16xf32>,
    %c0_14 = arith.constant 0 : index
    %c96 = arith.constant 96 : index
    %14 = vector.load %arg1[%c0_14, %c96] : memref<8x256xf32, #tpu.memory_space<vmem>>, vector<8x16xf32>
    %c0_15 = arith.constant 0 : index
    %c244 = arith.constant 244 : index
    %15 = vector.load %arg2[%c0_15, %c244] : memref<8x576xf32, #tpu.memory_space<vmem>>, vector<8x16xf32>
    tpu.vector_store %arg2[%c0_15, %c244], %14 {strides = array<i32>} : memref<8x576xf32, #tpu.memory_space<vmem>>, vector<8x16xf32>,
    %c0_16 = arith.constant 0 : index
    %c112 = arith.constant 112 : index
    %16 = vector.load %arg1[%c0_16, %c112] : memref<8x256xf32, #tpu.memory_space<vmem>>, vector<8x16xf32>
    %c0_17 = arith.constant 0 : index
    %c268 = arith.constant 268 : index
    %17 = vector.load %arg2[%c0_17, %c268] : memref<8x576xf32, #tpu.memory_space<vmem>>, vector<8x16xf32>
    tpu.vector_store %arg2[%c0_17, %c268], %16 {strides = array<i32>} : memref<8x576xf32, #tpu.memory_space<vmem>>, vector<8x16xf32>,
    %c0_18 = arith.constant 0 : index
    %c128 = arith.constant 128 : index
    %18 = vector.load %arg1[%c0_18, %c128] : memref<8x256xf32, #tpu.memory_space<vmem>>, vector<8x16xf32>
    %c0_19 = arith.constant 0 : index
    %c292 = arith.constant 292 : index
    %19 = vector.load %arg2[%c0_19, %c292] : memref<8x576xf32, #tpu.memory_space<vmem>>, vector<8x16xf32>
    tpu.vector_store %arg2[%c0_19, %c292], %18 {strides = array<i32>} : memref<8x576xf32, #tpu.memory_space<vmem>>, vector<8x16xf32>,
    %c0_20 = arith.constant 0 : index
    %c144 = arith.constant 144 : index
    %20 = vector.load %arg1[%c0_20, %c144] : memref<8x256xf32, #tpu.memory_space<vmem>>, vector<8x16xf32>
    %c0_21 = arith.constant 0 : index
    %c316 = arith.constant 316 : index
    %21 = vector.load %arg2[%c0_21, %c316] : memref<8x576xf32, #tpu.memory_space<vmem>>, vector<8x16xf32>
    tpu.vector_store %arg2[%c0_21, %c316], %20 {strides = array<i32>} : memref<8x576xf32, #tpu.memory_space<vmem>>, vector<8x16xf32>,
    %c0_22 = arith.constant 0 : index
    %c160 = arith.constant 160 : index
    %22 = vector.load %arg1[%c0_22, %c160] : memref<8x256xf32, #tpu.memory_space<vmem>>, vector<8x16xf32>
    %c0_23 = arith.constant 0 : index
    %c340 = arith.constant 340 : index
    %23 = vector.load %arg2[%c0_23, %c340] : memref<8x576xf32, #tpu.memory_space<vmem>>, vector<8x16xf32>
    tpu.vector_store %arg2[%c0_23, %c340], %22 {strides = array<i32>} : memref<8x576xf32, #tpu.memory_space<vmem>>, vector<8x16xf32>,
    %c0_24 = arith.constant 0 : index
    %c176 = arith.constant 176 : index
    %24 = vector.load %arg1[%c0_24, %c176] : memref<8x256xf32, #tpu.memory_space<vmem>>, vector<8x16xf32>
    %c0_25 = arith.constant 0 : index
    %c364 = arith.constant 364 : index
    %25 = vector.load %arg2[%c0_25, %c364] : memref<8x576xf32, #tpu.memory_space<vmem>>, vector<8x16xf32>
    tpu.vector_store %arg2[%c0_25, %c364], %24 {strides = array<i32>} : memref<8x576xf32, #tpu.memory_space<vmem>>, vector<8x16xf32>,
    %c0_26 = arith.constant 0 : index
    %c192 = arith.constant 192 : index
    %26 = vector.load %arg1[%c0_26, %c192] : memref<8x256xf32, #tpu.memory_space<vmem>>, vector<8x16xf32>
    %c0_27 = arith.constant 0 : index
    %c388 = arith.constant 388 : index
    %27 = vector.load %arg2[%c0_27, %c388] : memref<8x576xf32, #tpu.memory_space<vmem>>, vector<8x16xf32>
    tpu.vector_store %arg2[%c0_27, %c388], %26 {strides = array<i32>} : memref<8x576xf32, #tpu.memory_space<vmem>>, vector<8x16xf32>,
    %c0_28 = arith.constant 0 : index
    %c208 = arith.constant 208 : index
    %28 = vector.load %arg1[%c0_28, %c208] : memref<8x256xf32, #tpu.memory_space<vmem>>, vector<8x16xf32>
    %c0_29 = arith.constant 0 : index
    %c412 = arith.constant 412 : index
    %29 = vector.load %arg2[%c0_29, %c412] : memref<8x576xf32, #tpu.memory_space<vmem>>, vector<8x16xf32>
    tpu.vector_store %arg2[%c0_29, %c412], %28 {strides = array<i32>} : memref<8x576xf32, #tpu.memory_space<vmem>>, vector<8x16xf32>,
    %c0_30 = arith.constant 0 : index
    %c224 = arith.constant 224 : index
    %30 = vector.load %arg1[%c0_30, %c224] : memref<8x256xf32, #tpu.memory_space<vmem>>, vector<8x16xf32>
    %c0_31 = arith.constant 0 : index
    %c436 = arith.constant 436 : index
    %31 = vector.load %arg2[%c0_31, %c436] : memref<8x576xf32, #tpu.memory_space<vmem>>, vector<8x16xf32>
    tpu.vector_store %arg2[%c0_31, %c436], %30 {strides = array<i32>} : memref<8x576xf32, #tpu.memory_space<vmem>>, vector<8x16xf32>,
    %c0_32 = arith.constant 0 : index
    %c240 = arith.constant 240 : index
    %32 = vector.load %arg1[%c0_32, %c240] : memref<8x256xf32, #tpu.memory_space<vmem>>, vector<8x16xf32>
    %c0_33 = arith.constant 0 : index
    %c460 = arith.constant 460 : index
    %33 = vector.load %arg2[%c0_33, %c460] : memref<8x576xf32, #tpu.memory_space<vmem>>, vector<8x16xf32>
    tpu.vector_store %arg2[%c0_33, %c460], %32 {strides = array<i32>} : memref<8x576xf32, #tpu.memory_space<vmem>>, vector<8x16xf32>,
    return
  }
  func.func @transform_0(%arg0: i32) -> (i32, i32) {
    %c0_i32 = arith.constant 0 : i32
    %c0_i32_0 = arith.constant 0 : i32
    return %arg0, %c0_i32 : i32, i32
  }
  func.func @transform_1(%arg0: i32) -> (i32, i32) {
    %c0_i32 = arith.constant 0 : i32
    %c0_i32_0 = arith.constant 0 : i32
    return %arg0, %c0_i32 : i32, i32
  }
}

</mosaic_0001>

<bundles_post_ra>
// kernel: tpu_custom_call.1
= control target key start
LH: loop header
LB: loop body
LE: loop exit
PB: predicated region body
PF: predicated region fallthrough
CT: control target
= control target key end

     0   :  { %6 = vsyncpa [#allocation3], 0  ;;  %s256_s0 = inlined_call_operand.hbm [shape: f32[8,256], index: 0, kind: input, shape index: {}]   ;;  %s257_s1 = inlined_call_operand.hbm [shape: f32[8,576], index: 1, kind: output, shape index: {}]  }
   0x1   :  { %7 = vsyncpa [#allocation4], 0  ;;  %s221_s6 = smov [#allocation2]  }
   0x2   :  { %s14_s7 = sshll.u32 %s221_s6, 4  ;;  %s15_s7 = int_to_ptr.vmem [resolvable:$true] %s14_s7 }
   0x3   :  { %s185_s8 = scalar_lea.vmem %s15_s7, 256  ;;  %p190_p1 = scmp.lt.s32.totalorder %s15_s7, %s15_s7 }
   0x4   :  { %p186_p0 = scmp.ne.s32.totalorder %s15_s7, %s185_s8  ;;  %p191_p2 = scmp.lt.s32.totalorder %s185_s8, %s185_s8 }
   0x6   :  { %p192_p3 = por %p191_p2, %p190_p1 }
   0x8   :  { %p193_p4 = pnand %p192_p3, %p186_p0 }
   0xa   :  { %196 = shalt.err (!%p193_p4)
}
   0xb   :  { %17 = dma.hbm_to_vmem [thread:$0]  %s256_s0, 256, %s15_s7, [#allocation3]  }
   0xc   :  { %217 = dma.done.wait [#allocation3], 256  }
   0xd   :  { %218 = vsyncadd [#allocation3], 4294967040  ;;  %v222_v0 = vmov 0.0   ;;  %v43_v1 = vld [vmem:[#allocation2] sm:$0xff]  ;;  %s223_s11 = smov 116   ;;  %s224_s12 = smov 108  }
   0xe   :  { %22 = vst [vmem:[#allocation5 + $0x8] sm:$0xff] %v222_v0  ;;  %21 = vst [vmem:[#allocation5] sm:$0xff] %v222_v0  ;;  %45 = vrot.lane.b32.xlu1 %v43_v1, %s223_s11  ;;  %36 = vrot.lane.b32.xlu0 %v43_v1, %s224_s12  ;;  %s225_s13 = smov 28   ;;  %s226_s14 = smov 20   ;;  %v87_v2 = vld [vmem:[#allocation2 + $0x8] sm:$0xff]  ;;  %vm25_vm0 = vcmask 523264  }
   0xf   :  { %23 = vst [vmem:[#allocation5 + $0x10] sm:$0xff] %v222_v0  ;;  %24 = vst [vmem:[#allocation5 + $0x18] sm:$0xff] %v222_v0  ;;  %s227_s15 = smov 36   ;;  %s228_s0 = smov 124   ;;  %vm41_vm1 = vcmask 97280   ;;  %vm48_vm2 = vcmask 294048  }
  0x10   :  { %s229_s16 = smov 4   ;;  %s230_s17 = smov 68   ;;  %26 = vst.msk [vmem:[#allocation5 + $0x20] sm:$0xff] %vm25_vm0, %v222_v0  ;;  %vm78_vm3 = vcmask 31744   ;;  %vm85_vm4 = vcmask 228448   ;;  %vm92_vm5 = vcmask 425248  }
  0x11   :  { %s231_s18 = smov 76   ;;  %s232_s19 = smov 44   ;;  %vm55_vm6 = vcmask 490848   ;;  %vm62_vm7 = vcmask 687648   ;;  %vm120_vm8 = vcmask 162848   ;;  %vm127_vm9 = vcmask 359648  }
  0x12   :  { %82 = vrot.lane.b32.xlu1 %v43_v1, %s225_s13  ;;  %73 = vrot.lane.b32.xlu0 %v43_v1, %s226_s14  ;;  %s233_s20 = smov 12   ;;  %s234_s21 = smov 100   ;;  %vm99_vm10 = vcmask 622048   ;;  %vm69_vm11 = vcmask 884448   ;;  %vm32_vm12 = vcmask 950048   ;;  %vm76_vm13 = vcmask 1048480  }
  0x13   :  { %s235_s22 = smov 84   ;;  %s236_s23 = smov 52   ;;  %vm39_vm14 = vcmask 1048544   ;;  %vm134_vm15 = vcmask 556448   ;;  %vm106_vm0 = vcmask 818848  }
  0x14   :  { %s237_s24 = smov 92   ;;  %s238_s25 = smov 60  }
  0x15   :  { %s239_s26 = smov [#allocation5]  }
  0x16   :  { %89 = vrot.lane.b32.xlu1 %v87_v2, %s227_s15  ;;  %52 = vrot.lane.b32.xlu0 %v43_v1, %s228_s0  ;;  %s149_s27 = sshll.u32 %s239_s26, 4  ;;  %s150_s27 = int_to_ptr.vmem [resolvable:$true] %s149_s27 }
  0x17   :  { %s197_s28 = scalar_lea.vmem %s150_s27, 640  ;;  %p202_p6 = scmp.lt.s32.totalorder %s150_s27, %s150_s27 }
  0x18   :  { %p198_p5 = scmp.ne.s32.totalorder %s150_s27, %s197_s28  ;;  %p203_p7 = scmp.lt.s32.totalorder %s197_s28, %s197_s28 }
  0x1a   :  { %59 = vrot.lane.b32.xlu1 %v43_v1, %s229_s16  ;;  %117 = vrot.lane.b32.xlu0 %v87_v2, %s230_s17  ;;  %p204_p8 = por %p203_p7, %p202_p6 }
  0x1c   :  { %p205_p9 = pnand %p204_p8, %p198_p5 }
  0x1e   :  { %124 = vrot.lane.b32.xlu1 %v87_v2, %s231_s18  ;;  %96 = vrot.lane.b32.xlu0 %v87_v2, %s232_s19 }
  0x22   :  { %66 = vrot.lane.b32.xlu1 %v43_v1, %s233_s20  ;;  %29 = vrot.lane.b32.xlu0 %v43_v1, %s234_s21 }
  0x26   :  { %131 = vrot.lane.b32.xlu1 %v87_v2, %s235_s22  ;;  %103 = vrot.lane.b32.xlu0 %v87_v2, %s236_s23 }
  0x2a   :  { %138 = vrot.lane.b32.xlu1 %v87_v2, %s237_s24  ;;  %110 = vrot.lane.b32.xlu0 %v87_v2, %s238_s25 }
  0x80   :  { %v46_v3 = vpop.permute.xlu1 %45  ;;  %v37_v4 = vpop.permute.xlu0 %36 }
  0x81   :  { %42 = vst.msk [vmem:[#allocation5 + $0x8] sm:$0xff] %vm41_vm1, %v37_v4  ;;  %vm141_vm1 = vcmask 753248  }
  0x82   :  { %49 = vst.msk [vmem:[#allocation5 + $0x8] sm:$0xff] %vm48_vm2, %v46_v3  ;;  %vm113_vm2 = vcmask 1015648  }
  0x84   :  { %v83_v5 = vpop.permute.xlu1 %82  ;;  %v74_v6 = vpop.permute.xlu0 %73 }
  0x85   :  { %79 = vst.msk [vmem:[#allocation5 + $0x10] sm:$0xff] %vm78_vm3, %v74_v6 }
  0x86   :  { %86 = vst.msk [vmem:[#allocation5 + $0x10] sm:$0xff] %vm85_vm4, %v83_v5 }
  0x88   :  { %v90_v7 = vpop.permute.xlu1 %89  ;;  %v53_v8 = vpop.permute.xlu0 %52 }
  0x89   :  { %93 = vst.msk [vmem:[#allocation5 + $0x10] sm:$0xff] %vm92_vm5, %v90_v7 }
  0x8a   :  { %56 = vst.msk [vmem:[#allocation5 + $0x8] sm:$0xff] %vm55_vm6, %v53_v8 }
  0x8c   :  { %v60_v9 = vpop.permute.xlu1 %59  ;;  %v118_v10 = vpop.permute.xlu0 %117 }
  0x8d   :  { %63 = vst.msk [vmem:[#allocation5 + $0x8] sm:$0xff] %vm62_vm7, %v60_v9 }
  0x8e   :  { %121 = vst.msk [vmem:[#allocation5 + $0x18] sm:$0xff] %vm120_vm8, %v118_v10 }
  0x90   :  { %v125_v11 = vpop.permute.xlu1 %124  ;;  %v97_v12 = vpop.permute.xlu0 %96 }
  0x91   :  { %128 = vst.msk [vmem:[#allocation5 + $0x18] sm:$0xff] %vm127_vm9, %v125_v11 }
  0x92   :  { %100 = vst.msk [vmem:[#allocation5 + $0x10] sm:$0xff] %vm99_vm10, %v97_v12 }
  0x94   :  { %v67_v13 = vpop.permute.xlu1 %66  ;;  %v30_v14 = vpop.permute.xlu0 %29 }
  0x95   :  { %70 = vst.msk [vmem:[#allocation5 + $0x8] sm:$0xff] %vm69_vm11, %v67_v13 }
  0x96   :  { %33 = vst.msk [vmem:[#allocation5] sm:$0xff] %vm32_vm12, %v30_v14 }
  0x97   :  { %77 = vst.msk [vmem:[#allocation5 + $0x8] sm:$0xff] %vm76_vm13, %v74_v6 }
  0x98   :  { %40 = vst.msk [vmem:[#allocation5] sm:$0xff] %vm39_vm14, %v37_v4  ;;  %v132_v15 = vpop.permute.xlu1 %131  ;;  %v104_v16 = vpop.permute.xlu0 %103 }
  0x99   :  { %135 = vst.msk [vmem:[#allocation5 + $0x18] sm:$0xff] %vm134_vm15, %v132_v15 }
  0x9a   :  { %107 = vst.msk [vmem:[#allocation5 + $0x10] sm:$0xff] %vm106_vm0, %v104_v16 }
  0x9c   :  { %v139_v17 = vpop.permute.xlu1 %138  ;;  %v111_v18 = vpop.permute.xlu0 %110 }
  0x9d   :  { %142 = vst.msk [vmem:[#allocation5 + $0x18] sm:$0xff] %vm141_vm1, %v139_v17 }
  0x9e   :  { %114 = vst.msk [vmem:[#allocation5 + $0x10] sm:$0xff] %vm113_vm2, %v111_v18 }
  0x9f   :  { %208 = shalt.err (!%p205_p9)
}
  0xa0   :  { %152 = dma.vmem_to_hbm [thread:$0]  %s150_s27, 640, %s257_s1, [#allocation4]  }
  0xa1   :  { %219 = dma.done.wait [#allocation4], 640  }
  0xa2   :  { %220 = vsyncadd [#allocation4], 4294966656 }
  0xa3   :  { %156 = vsyncpa [#allocation3], 1 }
  0xa4   :  { %157 = vsyncpa [#allocation4], 1 }

</bundles_post_ra>
